<compile_context>
chip_gen: v7x
topology: tpu7x:2x2x1
jax: 0.10.0
libtpu: 0.0.40
codegen_flags: <defaults>
</compile_context>

<pallas_src>
import functools

import jax
import jax.numpy as jnp
from jax import lax
from jax.experimental import pallas as pl
from jax.experimental.pallas import tpu as pltpu


def _round_up(x, m):
    return (x + m - 1) // m * m


def _pick_tile(dim, target, align):
    """Largest multiple of `align` that divides `dim` and is <= target (>= align)."""
    t = max(min(target, dim) // align * align, align)
    while dim % t:
        t -= align
    return t


# --------------------- kernel 1: build effective weight^T ---------------------

def _build_weff_kernel(adapt_ref, wbase_ref, wa3_ref, weff_ref, *, adapt_dim):
    # adapt_ref: (A,) f32 in SMEM
    # wbase_ref: (tkw, tnw) f32 = (weight^T + adapt_bias^T) tile (constant-folded)
    # wa3_ref:   (A, tkw, tnw) f32, wa3[a, i, o] = adapt_w[o*I + i, a]
    acc = wbase_ref[...]
    for a in range(adapt_dim):            # A is small: unrolled VPU mul-add chain
        acc = acc + adapt_ref[a] * wa3_ref[a]
    weff_ref[...] = acc.astype(weff_ref.dtype)


# ----------------------- kernel 2: y = x @ weff^T + bias ----------------------

def _matmul_bias_kernel(x_ref, w_ref, b_ref, o_ref, acc_ref):
    @pl.when(pl.program_id(2) == 0)
    def _init():
        acc_ref[...] = jnp.zeros_like(acc_ref)

    # bf16 operands, f32 accumulation: single-pass MXU.
    acc_ref[...] += jnp.dot(x_ref[...].astype(jnp.bfloat16), w_ref[...],
                            preferred_element_type=jnp.float32)

    @pl.when(pl.program_id(2) == pl.num_programs(2) - 1)
    def _finalize():
        o_ref[...] = (acc_ref[...] + b_ref[...]).astype(o_ref.dtype)


def adaptive_linear(x, adapt_input, weight, bias, adapt_w, adapt_b,
                    *, tm=256, tn=512, tk=512, tw=256):
    """x: (B, I), adapt_input: (A,), weight: (O, I), bias: (O,),
    adapt_w: (O*I, A), adapt_b: (O*I,)  ->  (B, O) f32."""
    B, I = x.shape
    O = weight.shape[0]
    A = adapt_input.shape[0]

    Bp = _round_up(B, 8)
    Ip = _round_up(I, 128)
    Op = _round_up(O, 128)

    # ---- parameter-only rearrangement + constant folding (wrapper glue) ----
    wa3 = adapt_w.reshape(O, I, A).transpose(2, 1, 0)          # (A, I, O)
    wa3 = jnp.pad(wa3, ((0, 0), (0, Ip - I), (0, Op - O)))
    wbase_t = weight.T + adapt_b.reshape(O, I).T               # fold adapt bias
    wbase_t = jnp.pad(wbase_t, ((0, Ip - I), (0, Op - O)))
    bias2 = jnp.pad(bias, (0, Op - O))[None, :]                # (1, Op)
    xp = jnp.pad(x, ((0, Bp - B), (0, Ip - I)))

    # ---- tile sizes: lane dims multiples of 128, sublane dims of 8 ----------
    tm = _pick_tile(Bp, tm, 8)
    tn = _pick_tile(Op, tn, 128)
    tk = _pick_tile(Ip, tk, 128)
    # kernel-1 tiles: the wa3 block is A x a weight tile, keep it ~<= 8 MiB
    tkw = _pick_tile(Ip, tw, 128)
    tnw_budget = max(128, (8 * 1024 * 1024) // (4 * max(A, 1) * tkw) // 128 * 128)
    tnw = _pick_tile(Op, min(tw, tnw_budget), 128)

    # ---- kernel 1: effective (transposed) weight, stored as bf16 ------------
    weff_t = pl.pallas_call(
        functools.partial(_build_weff_kernel, adapt_dim=A),
        out_shape=jax.ShapeDtypeStruct((Ip, Op), jnp.bfloat16),
        grid=(Ip // tkw, Op // tnw),
        in_specs=[
            pl.BlockSpec(memory_space=pltpu.MemorySpace.SMEM),     # adapt (A,)
            pl.BlockSpec((tkw, tnw), lambda i, j: (i, j)),         # weight^T + b_a^T
            pl.BlockSpec((A, tkw, tnw), lambda i, j: (0, i, j)),   # wa3
        ],
        out_specs=pl.BlockSpec((tkw, tnw), lambda i, j: (i, j)),
        compiler_params=pltpu.CompilerParams(
            dimension_semantics=("parallel", "parallel")),
    )(adapt_input, wbase_t, wa3)

    # ---- kernel 2: tiled MXU matmul with bias --------------------------------
    out = pl.pallas_call(
        _matmul_bias_kernel,
        out_shape=jax.ShapeDtypeStruct((Bp, Op), jnp.float32),
        grid=(Bp // tm, Op // tn, Ip // tk),
        in_specs=[
            pl.BlockSpec((tm, tk), lambda i, j, k: (i, k)),        # x
            pl.BlockSpec((tk, tn), lambda i, j, k: (k, j)),        # weff^T (bf16)
            pl.BlockSpec((1, tn), lambda i, j, k: (0, j)),         # bias
        ],
        out_specs=pl.BlockSpec((tm, tn), lambda i, j, k: (i, j)),
        scratch_shapes=[pltpu.VMEM((tm, tn), jnp.float32)],
        compiler_params=pltpu.CompilerParams(
            dimension_semantics=("parallel", "parallel", "arbitrary")),
    )(xp, weff_t, bias2)

    return out[:B, :O]


# --------------------------------- references ---------------------------------

def reference_f32(x, adapt_input, weight, bias, adapt_w, adapt_b):
    """Pure f32 module semantics."""
    O, I = weight.shape
    aw = (jnp.dot(adapt_input, adapt_w.T, precision=lax.Precision.HIGHEST)
          + adapt_b).reshape(O, I)
    weff = weight + aw
    return jnp.dot(x, weff.T, precision=lax.Precision.HIGHEST) + bias[None, :]


def reference_matched(x, adapt_input, weight, bias, adapt_w, adapt_b):
    """Mirrors the kernel arithmetic (f32 weight build, bf16 MXU operands,
    f32 accumulation); differs from the kernel only by accumulation order."""
    O, I = weight.shape
    A = adapt_input.shape[0]
    wa3 = adapt_w.reshape(O, I, A).transpose(2, 1, 0)
    weff_t = weight.T + adapt_b.reshape(O, I).T
    for a in range(A):
        weff_t = weff_t + adapt_input[a] * wa3[a]
    weff_t = weff_t.astype(jnp.bfloat16).astype(jnp.float32)
    xq = x.astype(jnp.bfloat16).astype(jnp.float32)
    return jnp.dot(xq, weff_t, precision=lax.Precision.HIGHEST) + bias[None, :]


if __name__ == "__main__":
    batch, in_features, out_features, adapt_dim = 4, 32, 16, 8

    key = jax.random.PRNGKey(0)
    k1, k2, k3, k4, k5, k6 = jax.random.split(key, 6)

    weight = jax.random.normal(k1, (out_features, in_features), jnp.float32)
    bias = jax.random.normal(k2, (out_features,), jnp.float32)
    adapt_w = jax.random.normal(k3, (out_features * in_features, adapt_dim),
                                jnp.float32) * 0.1
    adapt_b = jax.random.normal(k4, (out_features * in_features,),
                                jnp.float32) * 0.1

    x = jax.random.normal(k5, (batch, in_features), jnp.float32)
    adapt_input = jax.random.normal(k6, (adapt_dim,), jnp.float32)

    out = adaptive_linear(x, adapt_input, weight, bias, adapt_w, adapt_b)
    out = jax.block_until_ready(out)
    assert out.shape == (batch, out_features)

    # Tight check vs. a reference mirroring the kernel's bf16-on-MXU arithmetic.
    exp_m = reference_matched(x, adapt_input, weight, bias, adapt_w, adapt_b)
    err_m = jnp.max(jnp.abs(out - exp_m))
    assert jnp.allclose(out, exp_m, rtol=1e-2, atol=1e-2), f"matched max err {err_m}"

    # Loose sanity check vs. pure-f32 module semantics (bf16 MXU operands add
    # ~1e-2 absolute noise at these magnitudes).
    exp_f = reference_f32(x, adapt_input, weight, bias, adapt_w, adapt_b)
    err_f = jnp.max(jnp.abs(out - exp_f))
    assert jnp.allclose(out, exp_f, rtol=5e-2, atol=1e-1), f"f32 max err {err_f}"

    print("KERNEL_OK")
</pallas_src>

<mosaic_0001>
module attributes {stable_mosaic.version = 11 : i64} {
  func.func @_build_weff_kernel(%arg0: i32, %arg1: i32, %arg2: memref<8xf32, #tpu.memory_space<smem>>, %arg3: memref<128x128xf32, #tpu.memory_space<vmem>>, %arg4: memref<8x128x128xf32, #tpu.memory_space<vmem>>, %arg5: memref<128x128xbf16, #tpu.memory_space<vmem>>) attributes {dimension_semantics = [#tpu.dimension_semantics<parallel>, #tpu.dimension_semantics<parallel>], iteration_bounds = array<i64: 1, 1>, scalar_prefetch = 0 : i64, scratch_operands = 0 : i64, tpu.core_type = #tpu.core_type<tc>, window_params = [{transform_indices = @transform_0, window_bounds = array<i64: 8>}, {transform_indices = @transform_1, window_bounds = array<i64: 128, 128>}, {transform_indices = @transform_2, window_bounds = array<i64: 8, 128, 128>}, {transform_indices = @transform_3, window_bounds = array<i64: 128, 128>}]} {
    %c0 = arith.constant 0 : index
    %c0_0 = arith.constant 0 : index
    %0 = vector.load %arg3[%c0, %c0_0] : memref<128x128xf32, #tpu.memory_space<vmem>>, vector<128x128xf32>
    %c0_1 = arith.constant 0 : index
    %1 = memref.load %arg2[%c0_1] : memref<8xf32, #tpu.memory_space<smem>>
    %c0_2 = arith.constant 0 : index
    %c0_3 = arith.constant 0 : index
    %c0_4 = arith.constant 0 : index
    %2 = vector.load %arg4[%c0_2, %c0_3, %c0_4] : memref<8x128x128xf32, #tpu.memory_space<vmem>>, vector<1x128x128xf32>
    %3 = vector.shape_cast %2 : vector<1x128x128xf32> to vector<128x128xf32>
    %4 = vector.broadcast %1 : f32 to vector<128x128xf32>
    %5 = arith.mulf %4, %3 : vector<128x128xf32>
    %6 = arith.addf %0, %5 : vector<128x128xf32>
    %c1 = arith.constant 1 : index
    %7 = memref.load %arg2[%c1] : memref<8xf32, #tpu.memory_space<smem>>
    %c1_5 = arith.constant 1 : index
    %c0_6 = arith.constant 0 : index
    %c0_7 = arith.constant 0 : index
    %8 = vector.load %arg4[%c1_5, %c0_6, %c0_7] : memref<8x128x128xf32, #tpu.memory_space<vmem>>, vector<1x128x128xf32>
    %9 = vector.shape_cast %8 : vector<1x128x128xf32> to vector<128x128xf32>
    %10 = vector.broadcast %7 : f32 to vector<128x128xf32>
    %11 = arith.mulf %10, %9 : vector<128x128xf32>
    %12 = arith.addf %6, %11 : vector<128x128xf32>
    %c2 = arith.constant 2 : index
    %13 = memref.load %arg2[%c2] : memref<8xf32, #tpu.memory_space<smem>>
    %c2_8 = arith.constant 2 : index
    %c0_9 = arith.constant 0 : index
    %c0_10 = arith.constant 0 : index
    %14 = vector.load %arg4[%c2_8, %c0_9, %c0_10] : memref<8x128x128xf32, #tpu.memory_space<vmem>>, vector<1x128x128xf32>
    %15 = vector.shape_cast %14 : vector<1x128x128xf32> to vector<128x128xf32>
    %16 = vector.broadcast %13 : f32 to vector<128x128xf32>
    %17 = arith.mulf %16, %15 : vector<128x128xf32>
    %18 = arith.addf %12, %17 : vector<128x128xf32>
    %c3 = arith.constant 3 : index
    %19 = memref.load %arg2[%c3] : memref<8xf32, #tpu.memory_space<smem>>
    %c3_11 = arith.constant 3 : index
    %c0_12 = arith.constant 0 : index
    %c0_13 = arith.constant 0 : index
    %20 = vector.load %arg4[%c3_11, %c0_12, %c0_13] : memref<8x128x128xf32, #tpu.memory_space<vmem>>, vector<1x128x128xf32>
    %21 = vector.shape_cast %20 : vector<1x128x128xf32> to vector<128x128xf32>
    %22 = vector.broadcast %19 : f32 to vector<128x128xf32>
    %23 = arith.mulf %22, %21 : vector<128x128xf32>
    %24 = arith.addf %18, %23 : vector<128x128xf32>
    %c4 = arith.constant 4 : index
    %25 = memref.load %arg2[%c4] : memref<8xf32, #tpu.memory_space<smem>>
    %c4_14 = arith.constant 4 : index
    %c0_15 = arith.constant 0 : index
    %c0_16 = arith.constant 0 : index
    %26 = vector.load %arg4[%c4_14, %c0_15, %c0_16] : memref<8x128x128xf32, #tpu.memory_space<vmem>>, vector<1x128x128xf32>
    %27 = vector.shape_cast %26 : vector<1x128x128xf32> to vector<128x128xf32>
    %28 = vector.broadcast %25 : f32 to vector<128x128xf32>
    %29 = arith.mulf %28, %27 : vector<128x128xf32>
    %30 = arith.addf %24, %29 : vector<128x128xf32>
    %c5 = arith.constant 5 : index
    %31 = memref.load %arg2[%c5] : memref<8xf32, #tpu.memory_space<smem>>
    %c5_17 = arith.constant 5 : index
    %c0_18 = arith.constant 0 : index
    %c0_19 = arith.constant 0 : index
    %32 = vector.load %arg4[%c5_17, %c0_18, %c0_19] : memref<8x128x128xf32, #tpu.memory_space<vmem>>, vector<1x128x128xf32>
    %33 = vector.shape_cast %32 : vector<1x128x128xf32> to vector<128x128xf32>
    %34 = vector.broadcast %31 : f32 to vector<128x128xf32>
    %35 = arith.mulf %34, %33 : vector<128x128xf32>
    %36 = arith.addf %30, %35 : vector<128x128xf32>
    %c6 = arith.constant 6 : index
    %37 = memref.load %arg2[%c6] : memref<8xf32, #tpu.memory_space<smem>>
    %c6_20 = arith.constant 6 : index
    %c0_21 = arith.constant 0 : index
    %c0_22 = arith.constant 0 : index
    %38 = vector.load %arg4[%c6_20, %c0_21, %c0_22] : memref<8x128x128xf32, #tpu.memory_space<vmem>>, vector<1x128x128xf32>
    %39 = vector.shape_cast %38 : vector<1x128x128xf32> to vector<128x128xf32>
    %40 = vector.broadcast %37 : f32 to vector<128x128xf32>
    %41 = arith.mulf %40, %39 : vector<128x128xf32>
    %42 = arith.addf %36, %41 : vector<128x128xf32>
    %c7 = arith.constant 7 : index
    %43 = memref.load %arg2[%c7] : memref<8xf32, #tpu.memory_space<smem>>
    %c7_23 = arith.constant 7 : index
    %c0_24 = arith.constant 0 : index
    %c0_25 = arith.constant 0 : index
    %44 = vector.load %arg4[%c7_23, %c0_24, %c0_25] : memref<8x128x128xf32, #tpu.memory_space<vmem>>, vector<1x128x128xf32>
    %45 = vector.shape_cast %44 : vector<1x128x128xf32> to vector<128x128xf32>
    %46 = vector.broadcast %43 : f32 to vector<128x128xf32>
    %47 = arith.mulf %46, %45 : vector<128x128xf32>
    %48 = arith.addf %42, %47 : vector<128x128xf32>
    %49 = arith.truncf %48 : vector<128x128xf32> to vector<128x128xbf16>
    %c0_26 = arith.constant 0 : index
    %c0_27 = arith.constant 0 : index
    %50 = vector.load %arg5[%c0_26, %c0_27] : memref<128x128xbf16, #tpu.memory_space<vmem>>, vector<128x128xbf16>
    tpu.vector_store %arg5[%c0_26, %c0_27], %49 {strides = array<i32>} : memref<128x128xbf16, #tpu.memory_space<vmem>>, vector<128x128xbf16>,
    return
  }
  func.func @transform_0(%arg0: i32, %arg1: i32) -> i32 {
    %c0_i32 = arith.constant 0 : i32
    %c0_i32_0 = arith.constant 0 : i32
    return %c0_i32 : i32
  }
  func.func @transform_1(%arg0: i32, %arg1: i32) -> (i32, i32) {
    %c0_i32 = arith.constant 0 : i32
    return %arg0, %arg1 : i32, i32
  }
  func.func @transform_2(%arg0: i32, %arg1: i32) -> (i32, i32, i32) {
    %c0_i32 = arith.constant 0 : i32
    %c0_i32_0 = arith.constant 0 : i32
    return %c0_i32, %arg0, %arg1 : i32, i32, i32
  }
  func.func @transform_3(%arg0: i32, %arg1: i32) -> (i32, i32) {
    %c0_i32 = arith.constant 0 : i32
    return %arg0, %arg1 : i32, i32
  }
}

</mosaic_0001>

<bundles_post_ra>
// kernel: tpu_custom_call.1
= control target key start
LH: loop header
LB: loop body
LE: loop exit
PB: predicated region body
PF: predicated region fallthrough
CT: control target
= control target key end

     0   :  { %8 = vsyncpa [#allocation5], 0  ;;  %s983_s0 = inlined_call_operand.hbm [shape: f32[8], index: 0, kind: input, shape index: {}]   ;;  %s984_s1 = inlined_call_operand.hbm [shape: f32[128,128], index: 1, kind: input, shape index: {}]   ;;  %s985_s2 = inlined_call_operand.hbm [shape: f32[8,128,128], index: 2, kind: input, shape index: {}]   ;;  %s986_s3 = inlined_call_operand.hbm [shape: bf16[128,128], index: 3, kind: output, shape index: {}]  }
   0x1   :  { %9 = vsyncpa [#allocation3], 0 }
   0x2   :  { %10 = vsyncpa [#allocation8], 0 }
   0x3   :  { %11 = vsyncpa [#allocation4], 0  ;;  %s670_s14 = scalar_lea.hbm %s983_s0, 16 }
   0x4   :  { %p671_p0 = scmp.ne.s32.totalorder %s983_s0, %s670_s14  ;;  %p674_p1 = scmp.lt.u32.totalorder %s670_s14, %s983_s0 }
   0x6   :  { %p676_p2 = pnand %p674_p1, %p671_p0 }
   0x8   :  { %679 = shalt.err (!%p676_p2)
}
   0x9   :  { %s754_s19 = smov [#allocation2]   ;;  %s755_s22 = smov [#allocation6]  }
   0xa   :  { %19 = dma.hbm_to_smem %s983_s0, 16, %s754_s19, [#allocation5]  }
   0xb   :  { %s25_s23 = sshll.u32 %s755_s22, 4  ;;  %s680_s26 = scalar_lea.hbm %s984_s1, 2048  ;;  %s26_s23 = int_to_ptr.vmem [resolvable:$true] %s25_s23 }
   0xc   :  { %p681_p3 = scmp.ne.s32.totalorder %s984_s1, %s680_s26  ;;  %p684_p4 = scmp.lt.u32.totalorder %s680_s26, %s984_s1 }
   0xe   :  { %p686_p5 = pnand %p684_p4, %p681_p3 }
  0x10   :  { %689 = shalt.err (!%p686_p5)
}
  0x11   :  { %s690_s4 = scalar_lea.vmem %s26_s23, 2048  ;;  %p695_p7 = scmp.lt.s32.totalorder %s26_s23, %s26_s23 }
  0x12   :  { %p691_p6 = scmp.ne.s32.totalorder %s26_s23, %s690_s4  ;;  %p696_p8 = scmp.lt.s32.totalorder %s690_s4, %s690_s4 }
  0x14   :  { %p697_p9 = por %p696_p8, %p695_p7 }
  0x16   :  { %p698_p10 = pnand %p697_p9, %p691_p6 }
  0x18   :  { %701 = shalt.err (!%p698_p10)
}
  0x19   :  { %s756_s0 = smov 128   ;;  %s757_s5 = smov 8  }
  0x1a   :  { %31 = dma.hbm_to_vmem [thread:$0]  %s984_s1, 2048, %s26_s23, [#allocation3], %s756_s0, %s756_s0, %s757_s5  }
  0x1b   :  { %s758_s8 = smov [#allocation7]   ;;  %s702_s12 = scalar_lea.hbm %s985_s2, 16384 }
  0x1c   :  { %s37_s9 = sshll.u32 %s758_s8, 4  ;;  %p703_p11 = scmp.ne.s32.totalorder %s985_s2, %s702_s12  ;;  %s38_s9 = int_to_ptr.vmem [resolvable:$true] %s37_s9 }
  0x1d   :  { %p706_p12 = scmp.lt.u32.totalorder %s702_s12, %s985_s2 }
  0x1f   :  { %p708_p13 = pnand %p706_p12, %p703_p11 }
  0x21   :  { %711 = shalt.err (!%p708_p13)
}
  0x22   :  { %s712_s17 = scalar_lea.vmem %s38_s9, 16384  ;;  %p717_p1 = scmp.lt.s32.totalorder %s38_s9, %s38_s9 }
  0x23   :  { %p713_p0 = scmp.ne.s32.totalorder %s38_s9, %s712_s17  ;;  %p718_p2 = scmp.lt.s32.totalorder %s712_s17, %s712_s17 }
  0x25   :  { %p719_p3 = por %p718_p2, %p717_p1 }
  0x27   :  { %p720_p4 = pnand %p719_p3, %p713_p0 }
  0x29   :  { %723 = shalt.err (!%p720_p4)
}
  0x2a   :  { %43 = dma.hbm_to_vmem [thread:$0]  %s985_s2, 16384, %s38_s9, [#allocation8], %s756_s0, %s756_s0, %s757_s5  }
  0x2b   :  { %746 = dma.done.wait [#allocation5], 16  }
  0x2c   :  { %747 = vsyncadd [#allocation5], 4294967280 }
  0x2d   :  { %748 = dma.done.wait [#allocation3], 2048  }
  0x2e   :  { %749 = vsyncadd [#allocation3], 4294965248 }
  0x2f   :  { %750 = dma.done.wait [#allocation8], 16384  }
  0x30   :  { %751 = vsyncadd [#allocation8], 4294950912 }
  0x31   :  { %53 = sfence }
  0x32   :  { %s70_s19 = sld [smem:[#allocation2]]  ;;  %s576_s20 = sld [smem:[#allocation2 + $0x1]]  ;;  %v54_v0 = vld [vmem:[#allocation6] sm:$0xff]  ;;  %v72_v2 = vld [vmem:[#allocation7 + $0x8] sm:$0xff]  ;;  %v73_v38 = vld [vmem:[#allocation7 + $0x10] sm:$0xff] }
  0x33   :  { %s577_s21 = sld [smem:[#allocation2 + $0x2]]  ;;  %s578_s22 = sld [smem:[#allocation2 + $0x3]]  ;;  %v71_v1 = vld [vmem:[#allocation7] sm:$0xff]  ;;  %v123_v4 = vld [vmem:[#allocation7 + $0x88] sm:$0xff]  ;;  %v74_v39 = vld [vmem:[#allocation7 + $0x18] sm:$0xff] }
  0x34   :  { %s818_s23 = sld [smem:[#allocation2 + $0x4]]  ;;  %s580_s24 = sld [smem:[#allocation2 + $0x5]]  ;;  %v122_v3 = vld [vmem:[#allocation7 + $0x80] sm:$0xff]  ;;  %v55_v5 = vld [vmem:[#allocation6 + $0x8] sm:$0xff]  ;;  %v56_v44 = vld [vmem:[#allocation6 + $0x10] sm:$0xff] }
  0x35   :  { %s820_s2 = sld [smem:[#allocation2 + $0x6]]  ;;  %s822_s25 = sld [smem:[#allocation2 + $0x7]]  ;;  %v173_v7 = vld [vmem:[#allocation7 + $0x100] sm:$0xff]  ;;  %v174_v8 = vld [vmem:[#allocation7 + $0x108] sm:$0xff]  ;;  %v124_v45 = vld [vmem:[#allocation7 + $0x90] sm:$0xff] }
  0x36   :  { %v224_v12 = vld [vmem:[#allocation7 + $0x180] sm:$0xff]  ;;  %v225_v13 = vld [vmem:[#allocation7 + $0x188] sm:$0xff]  ;;  %v125_v46 = vld [vmem:[#allocation7 + $0x98] sm:$0xff]  ;;  %s759_s26 = smov [#allocation9]  }
  0x37   :  { %v275_v18 = vld [vmem:[#allocation7 + $0x200] sm:$0xff]  ;;  %v276_v19 = vld [vmem:[#allocation7 + $0x208] sm:$0xff]  ;;  %v57_v51 = vld [vmem:[#allocation6 + $0x18] sm:$0xff]  ;;  %s562_s27 = sshll.u32 %s759_s26, 4  ;;  %s563_s27 = int_to_ptr.vmem [resolvable:$true] %s562_s27 }
  0x38   :  { %v824_v6 = vstv %s70_s19  ;;  %v828_v11 = vstv %s576_s20  ;;  %v326_v24 = vld [vmem:[#allocation7 + $0x280] sm:$0xff]  ;;  %v327_v25 = vld [vmem:[#allocation7 + $0x288] sm:$0xff]  ;;  %v175_v52 = vld [vmem:[#allocation7 + $0x110] sm:$0xff]  ;;  %s724_s28 = scalar_lea.vmem %s563_s27, 1024  ;;  %p729_p6 = scmp.lt.s32.totalorder %s563_s27, %s563_s27 }
  0x39   :  { %v88_v9 = vmul.f32 %v824_v6, %v71_v1  ;;  %v89_v10 = vmul.f32 %v824_v6, %v72_v2  ;;  %v139_v14 = vmul.f32 %v828_v11, %v122_v3  ;;  %v140_v15 = vmul.f32 %v828_v11, %v123_v4  ;;  %v377_v30 = vld [vmem:[#allocation7 + $0x300] sm:$0xff]  ;;  %v378_v31 = vld [vmem:[#allocation7 + $0x308] sm:$0xff]  ;;  %v176_v53 = vld [vmem:[#allocation7 + $0x118] sm:$0xff]  ;;  %p725_p5 = scmp.ne.s32.totalorder %s563_s27, %s724_s28  ;;  %p730_p7 = scmp.lt.s32.totalorder %s724_s28, %s724_s28 }
  0x3a   :  { %v832_v16 = vstv %s577_s21  ;;  %v834_v17 = vstv %s578_s22  ;;  %v841_v28 = vstv %s818_s23  ;;  %v843_v29 = vstv %s580_s24  ;;  %v428_v32 = vld [vmem:[#allocation7 + $0x380] sm:$0xff]  ;;  %v429_v37 = vld [vmem:[#allocation7 + $0x388] sm:$0xff]  ;;  %v226_v58 = vld [vmem:[#allocation7 + $0x190] sm:$0xff] }
  0x3b   :  { %v104_v20 = vadd.f32 %v88_v9, %v54_v0  ;;  %v105_v21 = vadd.f32 %v89_v10, %v55_v5  ;;  %v190_v22 = vmul.f32 %v832_v16, %v173_v7  ;;  %v191_v23 = vmul.f32 %v832_v16, %v174_v8  ;;  %v227_v59 = vld [vmem:[#allocation7 + $0x198] sm:$0xff]  ;;  %v277_v0 = vld [vmem:[#allocation7 + $0x210] sm:$0xff]  ;;  %p731_p8 = por %p730_p7, %p729_p6 }
  0x3c   :  { %v241_v26 = vmul.f32 %v834_v17, %v224_v12  ;;  %v242_v27 = vmul.f32 %v834_v17, %v225_v13  ;;  %v292_v35 = vmul.f32 %v841_v28, %v275_v18  ;;  %v293_v36 = vmul.f32 %v841_v28, %v276_v19  ;;  %v278_v1 = vld [vmem:[#allocation7 + $0x218] sm:$0xff]  ;;  %v328_v7 = vld [vmem:[#allocation7 + $0x290] sm:$0xff] }
  0x3d   :  { %v155_v33 = vadd.f32 %v139_v14, %v104_v20  ;;  %v156_v34 = vadd.f32 %v140_v15, %v105_v21  ;;  %v343_v40 = vmul.f32 %v843_v29, %v326_v24  ;;  %v344_v41 = vmul.f32 %v843_v29, %v327_v25  ;;  %v329_v8 = vld [vmem:[#allocation7 + $0x298] sm:$0xff]  ;;  %v379_v14 = vld [vmem:[#allocation7 + $0x310] sm:$0xff]  ;;  %p732_p9 = pnand %p731_p8, %p725_p5 }
  0x3e   :  { %v850_v42 = vstv %s820_s2  ;;  %v853_v43 = vstv %s822_s25  ;;  %v90_v56 = vmul.f32 %v824_v6, %v73_v38  ;;  %v91_v57 = vmul.f32 %v824_v6, %v74_v39  ;;  %v380_v15 = vld [vmem:[#allocation7 + $0x318] sm:$0xff] }
  0x3f   :  { %v206_v47 = vadd.f32 %v190_v22, %v155_v33  ;;  %v207_v48 = vadd.f32 %v191_v23, %v156_v34  ;;  %v394_v49 = vmul.f32 %v850_v42, %v377_v30  ;;  %v395_v50 = vmul.f32 %v850_v42, %v378_v31  ;;  %v430_v22 = vld [vmem:[#allocation7 + $0x390] sm:$0xff]  ;;  %v431_v23 = vld [vmem:[#allocation7 + $0x398] sm:$0xff]  ;;  %v75_v30 = vld [vmem:[#allocation7 + $0x20] sm:$0xff] }
  0x40   :  { %v445_v54 = vmul.f32 %v853_v43, %v428_v32  ;;  %v446_v55 = vmul.f32 %v853_v43, %v429_v37  ;;  %v141_v62 = vmul.f32 %v828_v11, %v124_v45  ;;  %v142_v63 = vmul.f32 %v828_v11, %v125_v46  ;;  %v76_v31 = vld [vmem:[#allocation7 + $0x28] sm:$0xff] }
  0x41   :  { %v257_v60 = vadd.f32 %v241_v26, %v206_v47  ;;  %v258_v61 = vadd.f32 %v242_v27, %v207_v48  ;;  %v106_v2 = vadd.f32 %v90_v56, %v56_v44  ;;  %v107_v3 = vadd.f32 %v91_v57, %v57_v51  ;;  %v127_v37 = vld [vmem:[#allocation7 + $0xa8] sm:$0xff]  ;;  %v228_v56 = vld [vmem:[#allocation7 + $0x1a0] sm:$0xff] }
  0x42   :  { %v192_v4 = vmul.f32 %v832_v16, %v175_v52  ;;  %v193_v5 = vmul.f32 %v832_v16, %v176_v53  ;;  %v243_v12 = vmul.f32 %v834_v17, %v226_v58  ;;  %v244_v13 = vmul.f32 %v834_v17, %v227_v59  ;;  %v59_v45 = vld [vmem:[#allocation6 + $0x28] sm:$0xff]  ;;  %v177_v52 = vld [vmem:[#allocation7 + $0x120] sm:$0xff] }
  0x43   :  { %v308_v9 = vadd.f32 %v292_v35, %v257_v60  ;;  %v309_v10 = vadd.f32 %v293_v36, %v258_v61  ;;  %v157_v18 = vadd.f32 %v141_v62, %v106_v2  ;;  %v158_v19 = vadd.f32 %v142_v63, %v107_v3  ;;  %v126_v36 = vld [vmem:[#allocation7 + $0xa0] sm:$0xff]  ;;  %v178_v53 = vld [vmem:[#allocation7 + $0x128] sm:$0xff] }
  0x44   :  { %v294_v20 = vmul.f32 %v841_v28, %v277_v0  ;;  %v295_v21 = vmul.f32 %v841_v28, %v278_v1  ;;  %v345_v26 = vmul.f32 %v843_v29, %v328_v7  ;;  %v346_v27 = vmul.f32 %v843_v29, %v329_v8  ;;  %v229_v63 = vld [vmem:[#allocation7 + $0x1a8] sm:$0xff]  ;;  %v279_v0 = vld [vmem:[#allocation7 + $0x220] sm:$0xff] }
  0x45   :  { %v359_v24 = vadd.f32 %v343_v40, %v308_v9  ;;  %v360_v25 = vadd.f32 %v344_v41, %v309_v10  ;;  %v208_v32 = vadd.f32 %v192_v4, %v157_v18  ;;  %v209_v33 = vadd.f32 %v193_v5, %v158_v19  ;;  %v58_v41 = vld [vmem:[#allocation6 + $0x20] sm:$0xff]  ;;  %v280_v1 = vld [vmem:[#allocation7 + $0x228] sm:$0xff] }
  0x46   :  { %v396_v34 = vmul.f32 %v850_v42, %v379_v14  ;;  %v397_v35 = vmul.f32 %v850_v42, %v380_v15  ;;  %v447_v44 = vmul.f32 %v853_v43, %v430_v22  ;;  %v448_v40 = vmul.f32 %v853_v43, %v431_v23  ;;  %v331_v10 = vld [vmem:[#allocation7 + $0x2a8] sm:$0xff]  ;;  %v432_v19 = vld [vmem:[#allocation7 + $0x3a0] sm:$0xff] }
  0x47   :  { %v410_v38 = vadd.f32 %v394_v49, %v359_v24  ;;  %v411_v39 = vadd.f32 %v395_v50, %v360_v25  ;;  %v259_v46 = vadd.f32 %v243_v12, %v208_v32  ;;  %v260_v47 = vadd.f32 %v244_v13, %v209_v33  ;;  %v381_v12 = vld [vmem:[#allocation7 + $0x320] sm:$0xff]  ;;  %v382_v13 = vld [vmem:[#allocation7 + $0x328] sm:$0xff]  ;;  %v77_v24 = vld [vmem:[#allocation7 + $0x30] sm:$0xff] }
  0x48   :  { %v92_v48 = vmul.f32 %v824_v6, %v75_v30  ;;  %v93_v51 = vmul.f32 %v824_v6, %v76_v31  ;;  %v143_v49 = vmul.f32 %v828_v11, %v126_v36  ;;  %v144_v50 = vmul.f32 %v828_v11, %v127_v37  ;;  %v78_v25 = vld [vmem:[#allocation7 + $0x38] sm:$0xff]  ;;  %v60_v33 = vld [vmem:[#allocation6 + $0x30] sm:$0xff] }
  0x49   :  { %v461_v57 = vadd.f32 %v445_v54, %v410_v38  ;;  %v462_v58 = vadd.f32 %v446_v55, %v411_v39  ;;  %v310_v59 = vadd.f32 %v294_v20, %v259_v46  ;;  %v311_v60 = vadd.f32 %v295_v21, %v260_v47  ;;  %v330_v54 = vld [vmem:[#allocation7 + $0x2a0] sm:$0xff]  ;;  %v129_v36 = vld [vmem:[#allocation7 + $0xb8] sm:$0xff]  ;;  %v433_v46 = vld [vmem:[#allocation7 + $0x3a8] sm:$0xff] }
  0x4a   :  { %v108_v61 = vadd.f32 %v92_v48, %v58_v41  ;;  %v109_v62 = vadd.f32 %v93_v51, %v59_v45  ;;  %v194_v3 = vmul.f32 %v832_v16, %v177_v52  ;;  %v195_v4 = vmul.f32 %v832_v16, %v178_v53  ;;  %v179_v41 = vld [vmem:[#allocation7 + $0x130] sm:$0xff]  ;;  %v180_v45 = vld [vmem:[#allocation7 + $0x138] sm:$0xff] }
  0x4b   :  { %v618_v2 = vpack.c.bf16 %v462_v58, %v461_v57  ;;  %v245_v5 = vmul.f32 %v834_v17, %v228_v56  ;;  %v361_v55 = vadd.f32 %v345_v26, %v310_v59  ;;  %v362_v7 = vadd.f32 %v346_v27, %v311_v60  ;;  %v128_v26 = vld [vmem:[#allocation7 + $0xb0] sm:$0xff] }
  0x4c   :  { %v159_v8 = vadd.f32 %v143_v49, %v108_v61  ;;  %v160_v9 = vadd.f32 %v144_v50, %v109_v62  ;;  %v246_v14 = vmul.f32 %v834_v17, %v229_v63  ;;  %v296_v15 = vmul.f32 %v841_v28, %v279_v0  ;;  %v230_v53 = vld [vmem:[#allocation7 + $0x1b0] sm:$0xff]  ;;  %v282_v62 = vld [vmem:[#allocation7 + $0x238] sm:$0xff] }
  0x4d   :  { %619 = vst [vmem:[#allocation9] sm:$0xff] %v618_v2   ;;  %v297_v18 = vmul.f32 %v841_v28, %v280_v1  ;;  %v412_v20 = vadd.f32 %v396_v34, %v361_v55  ;;  %v413_v21 = vadd.f32 %v397_v35, %v362_v7  ;;  %v347_v27 = vmul.f32 %v843_v29, %v330_v54  ;;  %v61_v35 = vld [vmem:[#allocation6 + $0x38] sm:$0xff]  ;;  %v281_v49 = vld [vmem:[#allocation7 + $0x230] sm:$0xff] }
  0x4e   :  { %v210_v22 = vadd.f32 %v194_v3, %v159_v8  ;;  %v211_v23 = vadd.f32 %v195_v4, %v160_v9  ;;  %v348_v30 = vmul.f32 %v843_v29, %v331_v10  ;;  %v398_v31 = vmul.f32 %v850_v42, %v381_v12  ;;  %v332_v63 = vld [vmem:[#allocation7 + $0x2b0] sm:$0xff]  ;;  %v333_v4 = vld [vmem:[#allocation7 + $0x2b8] sm:$0xff] }
  0x4f   :  { %v399_v32 = vmul.f32 %v850_v42, %v382_v13  ;;  %v463_v37 = vadd.f32 %v447_v44, %v412_v20  ;;  %v464_v38 = vadd.f32 %v448_v40, %v413_v21  ;;  %v449_v47 = vmul.f32 %v853_v43, %v432_v19  ;;  %v231_v40 = vld [vmem:[#allocation7 + $0x1b8] sm:$0xff]  ;;  %v434_v10 = vld [vmem:[#allocation7 + $0x3b0] sm:$0xff]  ;;  %v80_v19 = vld [vmem:[#allocation7 + $0x48] sm:$0xff] }
  0x50   :  { %v261_v39 = vadd.f32 %v245_v5, %v210_v22  ;;  %v262_v34 = vadd.f32 %v246_v14, %v211_v23  ;;  %v94_v48 = vmul.f32 %v824_v6, %v77_v24  ;;  %v95_v51 = vmul.f32 %v824_v6, %v78_v25  ;;  %v383_v5 = vld [vmem:[#allocation7 + $0x330] sm:$0xff]  ;;  %v384_v9 = vld [vmem:[#allocation7 + $0x338] sm:$0xff]  ;;  %v130_v24 = vld [vmem:[#allocation7 + $0xc0] sm:$0xff] }
  0x51   :  { %v145_v52 = vmul.f32 %v828_v11, %v128_v26  ;;  %v623_v56 = vpack.c.bf16 %v464_v38, %v463_v37  ;;  %v146_v44 = vmul.f32 %v828_v11, %v129_v36  ;;  %v196_v60 = vmul.f32 %v832_v16, %v179_v41  ;;  %v131_v25 = vld [vmem:[#allocation7 + $0xc8] sm:$0xff]  ;;  %v181_v26 = vld [vmem:[#allocation7 + $0x140] sm:$0xff] }
  0x52   :  { %v312_v57 = vadd.f32 %v296_v15, %v261_v39  ;;  %v313_v58 = vadd.f32 %v297_v18, %v262_v34  ;;  %v110_v50 = vadd.f32 %v94_v48, %v60_v33  ;;  %v111_v59 = vadd.f32 %v95_v51, %v61_v35  ;;  %v79_v18 = vld [vmem:[#allocation7 + $0x40] sm:$0xff]  ;;  %v63_v37 = vld [vmem:[#allocation6 + $0x48] sm:$0xff] }
  0x53   :  { %v197_v61 = vmul.f32 %v832_v16, %v180_v45  ;;  %655 = vst [vmem:[#allocation9 + $0x8] sm:$0xff] %v623_v56   ;;  %v450_v2 = vmul.f32 %v853_v43, %v433_v46  ;;  %v247_v3 = vmul.f32 %v834_v17, %v230_v53  ;;  %v248_v7 = vmul.f32 %v834_v17, %v231_v40  ;;  %v62_v36 = vld [vmem:[#allocation6 + $0x40] sm:$0xff]  ;;  %v182_v41 = vld [vmem:[#allocation7 + $0x148] sm:$0xff] }
  0x54   :  { %v363_v0 = vadd.f32 %v347_v27, %v312_v57  ;;  %v364_v1 = vadd.f32 %v348_v30, %v313_v58  ;;  %v161_v54 = vadd.f32 %v145_v52, %v110_v50  ;;  %v162_v55 = vadd.f32 %v146_v44, %v111_v59  ;;  %v232_v45 = vld [vmem:[#allocation7 + $0x1c0] sm:$0xff]  ;;  %v233_v46 = vld [vmem:[#allocation7 + $0x1c8] sm:$0xff] }
  0x55   :  { %v298_v8 = vmul.f32 %v841_v28, %v281_v49  ;;  %v299_v14 = vmul.f32 %v841_v28, %v282_v62  ;;  %v349_v15 = vmul.f32 %v843_v29, %v332_v63  ;;  %v350_v22 = vmul.f32 %v843_v29, %v333_v4  ;;  %v283_v53 = vld [vmem:[#allocation7 + $0x240] sm:$0xff]  ;;  %v284_v40 = vld [vmem:[#allocation7 + $0x248] sm:$0xff] }
  0x56   :  { %v414_v12 = vadd.f32 %v398_v31, %v363_v0  ;;  %v415_v13 = vadd.f32 %v399_v32, %v364_v1  ;;  %v212_v20 = vadd.f32 %v196_v60, %v161_v54  ;;  %v213_v21 = vadd.f32 %v197_v61, %v162_v55  ;;  %v435_v32 = vld [vmem:[#allocation7 + $0x3b8] sm:$0xff]  ;;  %v334_v49 = vld [vmem:[#allocation7 + $0x2c0] sm:$0xff]  ;;  %v335_v50 = vld [vmem:[#allocation7 + $0x2c8] sm:$0xff] }
  0x57   :  { %v400_v23 = vmul.f32 %v850_v42, %v383_v5  ;;  %v401_v31 = vmul.f32 %v850_v42, %v384_v9  ;;  %v451_v33 = vmul.f32 %v853_v43, %v434_v10  ;;  %v96_v34 = vmul.f32 %v824_v6, %v79_v18  ;;  %v385_v63 = vld [vmem:[#allocation7 + $0x340] sm:$0xff]  ;;  %v386_v4 = vld [vmem:[#allocation7 + $0x348] sm:$0xff]  ;;  %v81_v54 = vld [vmem:[#allocation7 + $0x50] sm:$0xff] }
  0x58   :  { %v465_v27 = vadd.f32 %v449_v47, %v414_v12  ;;  %v466_v30 = vadd.f32 %v450_v2, %v415_v13  ;;  %v263_v38 = vadd.f32 %v247_v3, %v212_v20  ;;  %v264_v39 = vadd.f32 %v248_v7, %v213_v21  ;;  %v436_v5 = vld [vmem:[#allocation7 + $0x3c0] sm:$0xff]  ;;  %v64_v10 = vld [vmem:[#allocation6 + $0x50] sm:$0xff]  ;;  %v133_v20 = vld [vmem:[#allocation7 + $0xd8] sm:$0xff] }
  0x59   :  { %v97_v35 = vmul.f32 %v824_v6, %v80_v19  ;;  %v147_v47 = vmul.f32 %v828_v11, %v130_v24  ;;  %v148_v51 = vmul.f32 %v828_v11, %v131_v25  ;;  %v198_v52 = vmul.f32 %v832_v16, %v181_v26  ;;  %v132_v19 = vld [vmem:[#allocation7 + $0xd0] sm:$0xff] }
  0x5a   :  { %v628_v48 = vpack.c.bf16 %v466_v30, %v465_v27  ;;  %v314_v56 = vadd.f32 %v298_v8, %v263_v38  ;;  %v315_v57 = vadd.f32 %v299_v14, %v264_v39  ;;  %v112_v58 = vadd.f32 %v96_v34, %v62_v36  ;;  %v183_v26 = vld [vmem:[#allocation7 + $0x150] sm:$0xff]  ;;  %v437_v38 = vld [vmem:[#allocation7 + $0x3c8] sm:$0xff] }
  0x5b   :  { %v113_v44 = vadd.f32 %v97_v35, %v63_v37  ;;  %v452_v59 = vmul.f32 %v853_v43, %v435_v32  ;;  %v199_v60 = vmul.f32 %v832_v16, %v182_v41  ;;  %v249_v61 = vmul.f32 %v834_v17, %v232_v45  ;;  %v234_v37 = vld [vmem:[#allocation7 + $0x1d0] sm:$0xff]  ;;  %v235_v45 = vld [vmem:[#allocation7 + $0x1d8] sm:$0xff] }
  0x5c   :  { %656 = vst [vmem:[#allocation9 + $0x10] sm:$0xff] %v628_v48   ;;  %v250_v62 = vmul.f32 %v834_v17, %v233_v46  ;;  %v365_v0 = vadd.f32 %v349_v15, %v314_v56  ;;  %v366_v1 = vadd.f32 %v350_v22, %v315_v57  ;;  %v163_v2 = vadd.f32 %v147_v47, %v112_v58  ;;  %v82_v15 = vld [vmem:[#allocation7 + $0x58] sm:$0xff] }
  0x5d   :  { %v164_v3 = vadd.f32 %v148_v51, %v113_v44  ;;  %v300_v55 = vmul.f32 %v841_v28, %v283_v53  ;;  %v301_v7 = vmul.f32 %v841_v28, %v284_v40  ;;  %v351_v8 = vmul.f32 %v843_v29, %v334_v49  ;;  %v285_v51 = vld [vmem:[#allocation7 + $0x250] sm:$0xff]  ;;  %v337_v40 = vld [vmem:[#allocation7 + $0x2d8] sm:$0xff] }
  0x5e   :  { %v352_v9 = vmul.f32 %v843_v29, %v335_v50  ;;  %v416_v12 = vadd.f32 %v400_v23, %v365_v0  ;;  %v417_v13 = vadd.f32 %v401_v31, %v366_v1  ;;  %v214_v14 = vadd.f32 %v198_v52, %v163_v2  ;;  %v65_v23 = vld [vmem:[#allocation6 + $0x58] sm:$0xff]  ;;  %v336_v44 = vld [vmem:[#allocation7 + $0x2d0] sm:$0xff] }
  0x5f   :  { %v215_v18 = vadd.f32 %v199_v60, %v164_v3  ;;  %v402_v21 = vmul.f32 %v850_v42, %v385_v63  ;;  %v403_v22 = vmul.f32 %v850_v42, %v386_v4  ;;  %v453_v24 = vmul.f32 %v853_v43, %v436_v5  ;;  %v184_v31 = vld [vmem:[#allocation7 + $0x158] sm:$0xff]  ;;  %v438_v3 = vld [vmem:[#allocation7 + $0x3d0] sm:$0xff]  ;;  %v83_v4 = vld [vmem:[#allocation7 + $0x60] sm:$0xff] }
  0x60   :  { %v98_v25 = vmul.f32 %v824_v6, %v81_v54  ;;  %v467_v27 = vadd.f32 %v451_v33, %v416_v12  ;;  %v468_v30 = vadd.f32 %v452_v59, %v417_v13  ;;  %v265_v32 = vadd.f32 %v249_v61, %v214_v14  ;;  %v286_v52 = vld [vmem:[#allocation7 + $0x258] sm:$0xff]  ;;  %v387_v61 = vld [vmem:[#allocation7 + $0x350] sm:$0xff] }
  0x61   :  { %v266_v36 = vadd.f32 %v250_v62, %v215_v18  ;;  %v99_v39 = vmul.f32 %v824_v6, %v82_v15  ;;  %v149_v35 = vmul.f32 %v828_v11, %v132_v19  ;;  %v150_v41 = vmul.f32 %v828_v11, %v133_v20  ;;  %v388_v62 = vld [vmem:[#allocation7 + $0x358] sm:$0xff]  ;;  %v66_v18 = vld [vmem:[#allocation6 + $0x60] sm:$0xff]  ;;  %v135_v15 = vld [vmem:[#allocation7 + $0xe8] sm:$0xff] }
  0x62   :  { %v114_v34 = vadd.f32 %v98_v25, %v64_v10  ;;  %v633_v46 = vpack.c.bf16 %v468_v30, %v467_v27  ;;  %v316_v48 = vadd.f32 %v300_v55, %v265_v32  ;;  %v200_v33 = vmul.f32 %v832_v16, %v183_v26  ;;  %v185_v19 = vld [vmem:[#allocation7 + $0x160] sm:$0xff]  ;;  %v186_v27 = vld [vmem:[#allocation7 + $0x168] sm:$0xff] }
  0x63   :  { %v317_v47 = vadd.f32 %v301_v7, %v266_v36  ;;  %v115_v53 = vadd.f32 %v99_v39, %v65_v23  ;;  %v201_v57 = vmul.f32 %v832_v16, %v184_v31  ;;  %v251_v58 = vmul.f32 %v834_v17, %v234_v37  ;;  %v439_v36 = vld [vmem:[#allocation7 + $0x3d8] sm:$0xff]  ;;  %v236_v37 = vld [vmem:[#allocation7 + $0x1e0] sm:$0xff] }
  0x64   :  { %v165_v56 = vadd.f32 %v149_v35, %v114_v34  ;;  %657 = vst [vmem:[#allocation9 + $0x18] sm:$0xff] %v633_v46   ;;  %v367_v49 = vadd.f32 %v351_v8, %v316_v48  ;;  %v454_v59 = vmul.f32 %v853_v43, %v437_v38  ;;  %v252_v60 = vmul.f32 %v834_v17, %v235_v45  ;;  %v84_v8 = vld [vmem:[#allocation7 + $0x68] sm:$0xff] }
  0x65   :  { %v368_v50 = vadd.f32 %v352_v9, %v317_v47  ;;  %v166_v63 = vadd.f32 %v150_v41, %v115_v53  ;;  %v302_v1 = vmul.f32 %v841_v28, %v285_v51  ;;  %v303_v2 = vmul.f32 %v841_v28, %v286_v52  ;;  %v134_v9 = vld [vmem:[#allocation7 + $0xe0] sm:$0xff]  ;;  %v237_v35 = vld [vmem:[#allocation7 + $0x1e8] sm:$0xff] }
  0x66   :  { %v216_v0 = vadd.f32 %v200_v33, %v165_v56  ;;  %v418_v5 = vadd.f32 %v402_v21, %v367_v49  ;;  %v353_v55 = vmul.f32 %v843_v29, %v336_v44  ;;  %v354_v7 = vmul.f32 %v843_v29, %v337_v40  ;;  %v287_v47 = vld [vmem:[#allocation7 + $0x260] sm:$0xff]  ;;  %v288_v33 = vld [vmem:[#allocation7 + $0x268] sm:$0xff] }
  0x67   :  { %v419_v54 = vadd.f32 %v403_v22, %v368_v50  ;;  %v217_v10 = vadd.f32 %v201_v57, %v166_v63  ;;  %v404_v13 = vmul.f32 %v850_v42, %v387_v61  ;;  %v405_v14 = vmul.f32 %v850_v42, %v388_v62  ;;  %v67_v22 = vld [vmem:[#allocation6 + $0x68] sm:$0xff]  ;;  %v338_v51 = vld [vmem:[#allocation7 + $0x2e0] sm:$0xff] }
  0x68   :  { %v267_v12 = vadd.f32 %v251_v58, %v216_v0  ;;  %v469_v20 = vadd.f32 %v453_v24, %v418_v5  ;;  %v455_v21 = vmul.f32 %v853_v43, %v438_v3  ;;  %v100_v26 = vmul.f32 %v824_v6, %v83_v4  ;;  %v339_v57 = vld [vmem:[#allocation7 + $0x2e8] sm:$0xff]  ;;  %v389_v50 = vld [vmem:[#allocation7 + $0x360] sm:$0xff] }
  0x69   :  { %v470_v25 = vadd.f32 %v454_v59, %v419_v54  ;;  %v268_v30 = vadd.f32 %v252_v60, %v217_v10  ;;  %v101_v23 = vmul.f32 %v824_v6, %v84_v8  ;;  %v151_v31 = vmul.f32 %v828_v11, %v134_v9  ;;  %v390_v59 = vld [vmem:[#allocation7 + $0x368] sm:$0xff]  ;;  %v85_v60 = vld [vmem:[#allocation7 + $0x70] sm:$0xff] }
  0x6a   :  { %v318_v32 = vadd.f32 %v302_v1, %v267_v12  ;;  %v116_v39 = vadd.f32 %v100_v26, %v66_v18  ;;  %v152_v34 = vmul.f32 %v828_v11, %v135_v15  ;;  %v202_v24 = vmul.f32 %v832_v16, %v185_v19  ;;  %v86_v1 = vld [vmem:[#allocation7 + $0x78] sm:$0xff]  ;;  %v187_v8 = vld [vmem:[#allocation7 + $0x170] sm:$0xff] }
  0x6b   :  { %v638_v38 = vpack.c.bf16 %v470_v25, %v469_v20  ;;  %v319_v41 = vadd.f32 %v303_v2, %v268_v30  ;;  %v117_v46 = vadd.f32 %v101_v23, %v67_v22  ;;  %v203_v48 = vmul.f32 %v832_v16, %v186_v27  ;;  %v136_v2 = vld [vmem:[#allocation7 + $0xf0] sm:$0xff]  ;;  %v188_v15 = vld [vmem:[#allocation7 + $0x178] sm:$0xff]  ;;  %v440_v25 = vld [vmem:[#allocation7 + $0x3e0] sm:$0xff] }
  0x6c   :  { %v369_v45 = vadd.f32 %v353_v55, %v318_v32  ;;  %v456_v52 = vmul.f32 %v853_v43, %v439_v36  ;;  %v167_v53 = vadd.f32 %v151_v31, %v116_v39  ;;  %v253_v56 = vmul.f32 %v834_v17, %v236_v37  ;;  %v68_v55 = vld [vmem:[#allocation6 + $0x70] sm:$0xff]  ;;  %v441_v27 = vld [vmem:[#allocation7 + $0x3e8] sm:$0xff]  ;;  %v239_v23 = vld [vmem:[#allocation7 + $0x1f8] sm:$0xff] }
  0x6d   :  { %658 = vst [vmem:[#allocation9 + $0x20] sm:$0xff] %v638_v38   ;;  %v370_v58 = vadd.f32 %v354_v7, %v319_v41  ;;  %v168_v40 = vadd.f32 %v152_v34, %v117_v46  ;;  %v254_v49 = vmul.f32 %v834_v17, %v237_v35  ;;  %v304_v62 = vmul.f32 %v841_v28, %v287_v47  ;;  %v137_v7 = vld [vmem:[#allocation7 + $0xf8] sm:$0xff]  ;;  %v238_v22 = vld [vmem:[#allocation7 + $0x1f0] sm:$0xff] }
  0x6e   :  { %v420_v44 = vadd.f32 %v404_v13, %v369_v45  ;;  %v218_v61 = vadd.f32 %v202_v24, %v167_v53  ;;  %v305_v63 = vmul.f32 %v841_v28, %v288_v33  ;;  %v355_v0 = vmul.f32 %v843_v29, %v338_v51  ;;  %v69_v13 = vld [vmem:[#allocation6 + $0x78] sm:$0xff]  ;;  %v289_v34 = vld [vmem:[#allocation7 + $0x270] sm:$0xff] }
  0x6f   :  { %v421_v3 = vadd.f32 %v405_v14, %v370_v58  ;;  %v219_v5 = vadd.f32 %v203_v48, %v168_v40  ;;  %v356_v54 = vmul.f32 %v843_v29, %v339_v57  ;;  %v406_v10 = vmul.f32 %v850_v42, %v389_v50  ;;  %v290_v45 = vld [vmem:[#allocation7 + $0x278] sm:$0xff]  ;;  %v340_v33 = vld [vmem:[#allocation7 + $0x2f0] sm:$0xff] }
  0x70   :  { %v471_v4 = vadd.f32 %v455_v21, %v420_v44  ;;  %v269_v9 = vadd.f32 %v253_v56, %v218_v61  ;;  %v407_v12 = vmul.f32 %v850_v42, %v390_v59  ;;  %v102_v18 = vmul.f32 %v824_v6, %v85_v60  ;;  %v341_v53 = vld [vmem:[#allocation7 + $0x2f8] sm:$0xff]  ;;  %v391_v44 = vld [vmem:[#allocation7 + $0x370] sm:$0xff] }
  0x71   :  { %v472_v19 = vadd.f32 %v456_v52, %v421_v3  ;;  %v270_v20 = vadd.f32 %v254_v49, %v219_v5  ;;  %v103_v14 = vmul.f32 %v824_v6, %v86_v1  ;;  %v153_v21 = vmul.f32 %v828_v11, %v136_v2  ;;  %v392_v59 = vld [vmem:[#allocation7 + $0x378] sm:$0xff] }
  0x72   :  { %v320_v26 = vadd.f32 %v304_v62, %v269_v9  ;;  %v118_v30 = vadd.f32 %v102_v18, %v68_v55  ;;  %v154_v32 = vmul.f32 %v828_v11, %v137_v7  ;;  %v204_v36 = vmul.f32 %v832_v16, %v187_v8  ;;  %v442_v62 = vld [vmem:[#allocation7 + $0x3f0] sm:$0xff]  ;;  %v443_v1 = vld [vmem:[#allocation7 + $0x3f8] sm:$0xff] }
  0x73   :  { %v643_v31 = vpack.c.bf16 %v472_v19, %v471_v4  ;;  %v321_v37 = vadd.f32 %v305_v63, %v270_v20  ;;  %v119_v38 = vadd.f32 %v103_v14, %v69_v13  ;;  %v205_v39 = vmul.f32 %v832_v16, %v188_v15 }
  0x74   :  { %v371_v24 = vadd.f32 %v355_v0, %v320_v26  ;;  %v457_v6 = vmul.f32 %v853_v43, %v440_v25  ;;  %v169_v35 = vadd.f32 %v153_v21, %v118_v30  ;;  %v255_v41 = vmul.f32 %v834_v17, %v238_v22 }
  0x75   :  { %659 = vst [vmem:[#allocation9 + $0x28] sm:$0xff] %v643_v31   ;;  %v372_v46 = vadd.f32 %v356_v54, %v321_v37  ;;  %v458_v11 = vmul.f32 %v853_v43, %v441_v27  ;;  %v170_v48 = vadd.f32 %v154_v32, %v119_v38  ;;  %v256_v47 = vmul.f32 %v834_v17, %v239_v23 }
  0x76   :  { %v422_v51 = vadd.f32 %v406_v10, %v371_v24  ;;  %v220_v52 = vadd.f32 %v204_v36, %v169_v35  ;;  %v306_v16 = vmul.f32 %v841_v28, %v289_v34  ;;  %v307_v58 = vmul.f32 %v841_v28, %v290_v45 }
  0x77   :  { %v423_v56 = vadd.f32 %v407_v12, %v372_v46  ;;  %v221_v57 = vadd.f32 %v205_v39, %v170_v48  ;;  %v357_v50 = vmul.f32 %v843_v29, %v340_v33  ;;  %v358_v17 = vmul.f32 %v843_v29, %v341_v53 }
  0x78   :  { %v473_v40 = vadd.f32 %v457_v6, %v422_v51  ;;  %v271_v49 = vadd.f32 %v255_v41, %v220_v52  ;;  %v408_v0 = vmul.f32 %v850_v42, %v391_v44  ;;  %v409_v4 = vmul.f32 %v850_v42, %v392_v59 }
  0x79   :  { %v474_v60 = vadd.f32 %v458_v11, %v423_v56  ;;  %v272_v61 = vadd.f32 %v256_v47, %v221_v57  ;;  %v459_v5 = vmul.f32 %v853_v43, %v442_v62  ;;  %v460_v55 = vmul.f32 %v853_v43, %v443_v1 }
  0x7a   :  { %v322_v63 = vadd.f32 %v306_v16, %v271_v49 }
  0x7b   :  { %v648_v2 = vpack.c.bf16 %v474_v60, %v473_v40  ;;  %v323_v3 = vadd.f32 %v307_v58, %v272_v61 }
  0x7c   :  { %v373_v28 = vadd.f32 %v357_v50, %v322_v63 }
  0x7d   :  { %660 = vst [vmem:[#allocation9 + $0x30] sm:$0xff] %v648_v2   ;;  %v374_v54 = vadd.f32 %v358_v17, %v323_v3 }
  0x7e   :  { %v424_v7 = vadd.f32 %v408_v0, %v373_v28 }
  0x7f   :  { %v425_v8 = vadd.f32 %v409_v4, %v374_v54 }
  0x80   :  { %v475_v29 = vadd.f32 %v459_v5, %v424_v7 }
  0x81   :  { %v476_v9 = vadd.f32 %v460_v55, %v425_v8 }
  0x83   :  { %v653_v10 = vpack.c.bf16 %v476_v9, %v475_v29 }
  0x85   :  { %661 = vst [vmem:[#allocation9 + $0x38] sm:$0xff] %v653_v10  }
  0x86   :  { %735 = shalt.err (!%p732_p9)
}
  0x87   :  { %s736_s4 = scalar_lea.hbm %s986_s3, 1024 }
  0x88   :  { %p737_p10 = scmp.ne.s32.totalorder %s986_s3, %s736_s4  ;;  %p740_p11 = scmp.lt.u32.totalorder %s736_s4, %s986_s3 }
  0x8a   :  { %p742_p12 = pnand %p740_p11, %p737_p10 }
  0x8c   :  { %745 = shalt.err (!%p742_p12)
}
  0x8d   :  { %s760_s8 = smov 64   ;;  %s761_s9 = smov 4  }
  0x8e   :  { %568 = dma.vmem_to_hbm [thread:$0]  %s563_s27, 1024, %s986_s3, [#allocation4], %s760_s8, %s760_s8, %s761_s9  }
  0x8f   :  { %752 = dma.done.wait [#allocation4], 1024  }
  0x90   :  { %753 = vsyncadd [#allocation4], 4294966272 }
  0x91   :  { %572 = vsyncpa [#allocation3], 1 }
  0x92   :  { %573 = vsyncpa [#allocation8], 1 }
  0x93   :  { %574 = vsyncpa [#allocation4], 1 }
  0x94   :  { %575 = vsyncpa [#allocation5], 1 }

</bundles_post_ra>
